<compile_context>
chip_gen: v5e
topology: v5e:2x2
jax: 0.10.0
libtpu: 0.0.40
codegen_flags: <defaults>
</compile_context>

<pallas_src>
import jax
import jax.numpy as jnp
from jax.experimental import pallas as pl
from jax.experimental.pallas import tpu as pltpu


def graph_retrieval_kernel(x_ref, rx_ref, ry_ref, wg_ref, bg_ref, wfused_ref, bp_ref,
                           out_ref, qproj_sc, glabel_sc, scoreq_sc, hemb_sc):
    """One (batch-block, retrieval-tile) grid step.

    x_ref     : (bb, N, F)      bf16 query node features (resident across k steps)
    rx_ref    : (kt, bb, N, F)  bf16 node features of kt retrieval graph batches (streamed)
    ry_ref    : (bb, K)         int32 retrieval labels
    wg_ref    : (F, D), bg_ref: (1, D)        GNN readout linear
    wfused_ref: (D, D+C) = [w_adapter | w_pred], bp_ref: (1, C)
    out_ref   : (bb, C)         adjusted_label
    scratch   : qproj_sc (bb,D), glabel_sc (bb,C), scoreq_sc (bb,1), hemb_sc (K,bb,D)
    """
    kt, bb, N, F = rx_ref.shape
    D = wg_ref.shape[1]
    C = bp_ref.shape[1]
    K = ry_ref.shape[1]

    kk = pl.program_id(1)
    nk = pl.num_programs(1)
    inv_n = jnp.float32(1.0 / N)
    wg = wg_ref[...]

    # ---- query-side work: once per batch block (first retrieval step) ------------
    @pl.when(kk == 0)
    def _init():
        pooled_q = jnp.sum(x_ref[...].astype(jnp.float32), axis=1) * inv_n        # (bb, F)
        emb_q = jnp.dot(pooled_q, wg, preferred_element_type=jnp.float32) + bg_ref[...]
        # fused graph_pred_linear + adapter projection (shared LHS emb_q)
        fused = jnp.dot(emb_q, wfused_ref[...], preferred_element_type=jnp.float32)  # (bb, D+C)
        q_proj = fused[:, :D]                                                      # (bb, D)
        logits = fused[:, D:] + bp_ref[...]                                        # (bb, C)
        logits = logits - jnp.max(logits, axis=1, keepdims=True)
        e = jnp.exp(logits)
        glabel_sc[...] = e / jnp.sum(e, axis=1, keepdims=True)                     # softmax
        qproj_sc[...] = q_proj
        scoreq_sc[...] = jnp.sum(q_proj * emb_q, axis=1, keepdims=True)            # (bb, 1)

    # ---- streamed retrieval readout: kt slots per step, ONE batched matmul -------
    pooled_r = jnp.sum(rx_ref[...].astype(jnp.float32), axis=2) * inv_n            # (kt, bb, F)
    emb_flat = jnp.dot(pooled_r.reshape(kt * bb, F), wg,
                       preferred_element_type=jnp.float32) + bg_ref[...]           # (kt*bb, D)
    hemb_sc[pl.ds(kk * kt, kt)] = emb_flat.reshape(kt, bb, D)

    # ---- finalize: softmax over K+1 slots + adjusted label -----------------------
    @pl.when(kk == nk - 1)
    def _finalize():
        q_proj = qproj_sc[...]                                                     # (bb, D)
        scores_kb = jnp.sum(hemb_sc[...] * q_proj[None, :, :], axis=2)             # (K, bb)
        scores = jnp.concatenate([scoreq_sc[...], scores_kb.T], axis=1)            # (bb, K+1)
        scores = scores - jnp.max(scores, axis=1, keepdims=True)
        es = jnp.exp(scores)
        att = es / jnp.sum(es, axis=1, keepdims=True)                              # (bb, K+1)

        adjusted = att[:, 0:1] * glabel_sc[...]                                    # (bb, C)
        class_ids = jax.lax.broadcasted_iota(jnp.int32, (bb, K, C), 2)
        match = (ry_ref[...][:, :, None] == class_ids).astype(jnp.float32)         # (bb, K, C)
        # NOTE: attention column k (NOT k+1) per retrieval slot k — reference quirk.
        adjusted = adjusted + jnp.sum(att[:, :K, None] * match, axis=1)
        out_ref[...] = adjusted


def _pick_bb(B):
    for cand in (64, 32, 16, 8):
        if B % cand == 0:
            return cand
    return B


def _pick_kt(K, bb, N, F, itemsize, budget_bytes=2 * 1024 * 1024):
    """Largest divisor of K whose rx tile fits the per-buffer VMEM budget."""
    kt = 1
    for cand in range(1, K + 1):
        if K % cand == 0 and cand * bb * N * F * itemsize <= budget_bytes:
            kt = cand
    return kt


def graph_retrieval_forward(x, retrieval_x, retrieval_y, params):
    B, N, F = x.shape
    K = retrieval_x.shape[0]
    D = params["w_gnn"].shape[1]
    C = params["w_pred"].shape[1]

    # bf16 node features (bandwidth-bound payload); small weights stay f32.
    x = x.astype(jnp.bfloat16)
    rx = retrieval_x.astype(jnp.bfloat16)
    ry = retrieval_y.astype(jnp.int32)
    w_gnn = params["w_gnn"].astype(jnp.float32)
    b_gnn = params["b_gnn"].astype(jnp.float32).reshape(1, D)
    w_fused = jnp.concatenate([params["w_adapter"].astype(jnp.float32),
                               params["w_pred"].astype(jnp.float32)], axis=1)   # (D, D+C)
    b_pred = params["b_pred"].astype(jnp.float32).reshape(1, C)

    bb = _pick_bb(B)
    kt = _pick_kt(K, bb, N, F, itemsize=2)
    assert B % bb == 0 and K % kt == 0
    grid = (B // bb, K // kt)

    return pl.pallas_call(
        graph_retrieval_kernel,
        out_shape=jax.ShapeDtypeStruct((B, C), jnp.float32),
        grid_spec=pltpu.PrefetchScalarGridSpec(
            num_scalar_prefetch=0,
            grid=grid,
            in_specs=[
                pl.BlockSpec((bb, N, F), lambda b, k: (b, 0, 0)),           # x (resident per b)
                pl.BlockSpec((kt, bb, N, F), lambda b, k: (k, b, 0, 0)),    # rx (streamed)
                pl.BlockSpec((bb, K), lambda b, k: (b, 0)),                 # ry
                pl.BlockSpec((F, D), lambda b, k: (0, 0)),                  # w_gnn
                pl.BlockSpec((1, D), lambda b, k: (0, 0)),                  # b_gnn
                pl.BlockSpec((D, D + C), lambda b, k: (0, 0)),              # [w_adapter|w_pred]
                pl.BlockSpec((1, C), lambda b, k: (0, 0)),                  # b_pred
            ],
            out_specs=pl.BlockSpec((bb, C), lambda b, k: (b, 0)),
            scratch_shapes=[
                pltpu.VMEM((bb, D), jnp.float32),      # q_proj
                pltpu.VMEM((bb, C), jnp.float32),      # g_label
                pltpu.VMEM((bb, 1), jnp.float32),      # query self-score
                pltpu.VMEM((K, bb, D), jnp.float32),   # retrieval embedding slab
            ]),
        compiler_params=pltpu.CompilerParams(
            dimension_semantics=("parallel", "arbitrary"),
            vmem_limit_bytes=32 * 1024 * 1024),
    )(x, rx, ry, w_gnn, b_gnn, w_fused, b_pred)
    # TODO(synk): if this forward is called per-minibatch over a dataset, batch several
    # independent forwards into one pallas_call (extra leading grid axis) so the output
    # lane dimension becomes a large multiple of 128 and launch overhead amortizes.


def reference_forward(x, retrieval_x, retrieval_y, params):
    """Pure-JAX reference with identical semantics (for correctness check)."""
    xf = x.astype(jnp.float32)
    rxf = retrieval_x.astype(jnp.float32)
    ry = retrieval_y.astype(jnp.int32)
    pooled_q = jnp.mean(xf, axis=1)
    emb_q = pooled_q @ params["w_gnn"] + params["b_gnn"]
    g_label = jax.nn.softmax(emb_q @ params["w_pred"] + params["b_pred"], axis=1)
    q_proj = emb_q @ params["w_adapter"]
    embs = [emb_q]
    for k in range(rxf.shape[0]):
        embs.append(jnp.mean(rxf[k], axis=1) @ params["w_gnn"] + params["b_gnn"])
    H = jnp.stack(embs, axis=1)                                   # (B, K+1, D)
    scores = jnp.einsum("bd,bmd->bm", q_proj, H)
    attention = jax.nn.softmax(scores, axis=1)
    adjusted = attention[:, 0:1] * g_label
    C = g_label.shape[1]
    class_ids = jnp.arange(C, dtype=jnp.int32)[None, :]
    for k in range(ry.shape[1]):
        match = (ry[:, k:k + 1] == class_ids).astype(jnp.float32)
        adjusted = adjusted + attention[:, k:k + 1] * match       # reference quirk: column k
    return adjusted


if __name__ == "__main__":
    # Small shapes: batch B=8, N=16 nodes/graph, node-feature F=32,
    # embedding D=32, C=8 classes, K=3 retrieval graph batches.
    B, N, F, D, C, K = 8, 16, 32, 32, 8, 3

    key = jax.random.PRNGKey(0)
    k_x, k_rx, k_ry, k_wg, k_bg, k_wp, k_bp, k_wa = jax.random.split(key, 8)

    # Node features are bf16 end-to-end (both kernel and reference see the same values).
    x = jax.random.normal(k_x, (B, N, F), dtype=jnp.float32).astype(jnp.bfloat16)
    retrieval_x = jax.random.normal(k_rx, (K, B, N, F), dtype=jnp.float32).astype(jnp.bfloat16)
    retrieval_y = jax.random.randint(k_ry, (B, K), 0, C, dtype=jnp.int32)

    params = {
        "w_gnn": jax.random.normal(k_wg, (F, D), dtype=jnp.float32) * 0.1,
        "b_gnn": jax.random.normal(k_bg, (1, D), dtype=jnp.float32) * 0.01,
        "w_pred": jax.random.normal(k_wp, (D, C), dtype=jnp.float32) * 0.1,
        "b_pred": jax.random.normal(k_bp, (1, C), dtype=jnp.float32) * 0.01,
        "w_adapter": jax.random.normal(k_wa, (D, D), dtype=jnp.float32) * 0.1,
    }

    out = graph_retrieval_forward(x, retrieval_x, retrieval_y, params)
    out = jax.block_until_ready(out)

    ref = reference_forward(x, retrieval_x, retrieval_y, params)
    assert out.shape == (B, C)
    assert jnp.allclose(out, ref, atol=1e-3, rtol=1e-3), "mismatch vs JAX reference"

    # TODO(synk): 'ogb' (sigmoid multi-label), 'lsc' (regression) and 'ddi' (pairwise
    # classifier) branches are not implemented; the message-passing GNN (edge_index
    # scatter) is stood in by a dense mean-pool + linear readout.
    print("KERNEL_OK")
</pallas_src>

<mosaic_0001>
module attributes {stable_mosaic.version = 11 : i64} {
  func.func @graph_retrieval_kernel(%arg0: i32, %arg1: i32, %arg2: memref<8x16x32xbf16, #tpu.memory_space<vmem>>, %arg3: memref<3x8x16x32xbf16, #tpu.memory_space<vmem>>, %arg4: memref<8x3xi32, #tpu.memory_space<vmem>>, %arg5: memref<32x32xf32, #tpu.memory_space<vmem>>, %arg6: memref<1x32xf32, #tpu.memory_space<vmem>>, %arg7: memref<32x40xf32, #tpu.memory_space<vmem>>, %arg8: memref<1x8xf32, #tpu.memory_space<vmem>>, %arg9: memref<8x8xf32, #tpu.memory_space<vmem>>, %arg10: memref<8x32xf32, #tpu.memory_space<vmem>>, %arg11: memref<8x8xf32, #tpu.memory_space<vmem>>, %arg12: memref<8x1xf32, #tpu.memory_space<vmem>>, %arg13: memref<3x8x32xf32, #tpu.memory_space<vmem>>) attributes {dimension_semantics = [#tpu.dimension_semantics<parallel>, #tpu.dimension_semantics<arbitrary>], iteration_bounds = array<i64: 1, 1>, scalar_prefetch = 0 : i64, scratch_operands = 4 : i64, tpu.core_type = #tpu.core_type<tc>, window_params = [{transform_indices = @transform_0, window_bounds = array<i64: 8, 16, 32>}, {transform_indices = @transform_1, window_bounds = array<i64: 3, 8, 16, 32>}, {transform_indices = @transform_2, window_bounds = array<i64: 8, 3>}, {pipeline_mode = #tpu.pipeline_mode<synchronous>, transform_indices = @transform_3, window_bounds = array<i64: 32, 32>}, {pipeline_mode = #tpu.pipeline_mode<synchronous>, transform_indices = @transform_4, window_bounds = array<i64: 1, 32>}, {pipeline_mode = #tpu.pipeline_mode<synchronous>, transform_indices = @transform_5, window_bounds = array<i64: 32, 40>}, {pipeline_mode = #tpu.pipeline_mode<synchronous>, transform_indices = @transform_6, window_bounds = array<i64: 1, 8>}, {transform_indices = @transform_7, window_bounds = array<i64: 8, 8>}]} {
    %c0 = arith.constant 0 : index
    %c0_0 = arith.constant 0 : index
    %0 = vector.load %arg5[%c0, %c0_0] : memref<32x32xf32, #tpu.memory_space<vmem>>, vector<32x32xf32>
    %c0_i32 = arith.constant 0 : i32
    %1 = arith.cmpi eq, %arg1, %c0_i32 : i32
    %2 = arith.extui %1 : i1 to i32
    %cst = arith.constant 6.250000e-02 : f32
    %c0_i32_1 = arith.constant 0 : i32
    %3 = arith.cmpi ne, %2, %c0_i32_1 : i32
    scf.if %3 {
      %c0_15 = arith.constant 0 : index
      %c0_16 = arith.constant 0 : index
      %c0_17 = arith.constant 0 : index
      %21 = vector.load %arg2[%c0_15, %c0_16, %c0_17] : memref<8x16x32xbf16, #tpu.memory_space<vmem>>, vector<8x16x32xbf16>
      %22 = arith.extf %21 : vector<8x16x32xbf16> to vector<8x16x32xf32>
      %cst_18 = arith.constant dense<0.000000e+00> : vector<8x32xf32>
      %23 = vector.multi_reduction <add>, %22, %cst_18 [1] : vector<8x16x32xf32> to vector<8x32xf32>
      %24 = vector.broadcast %cst : f32 to vector<8x32xf32>
      %25 = arith.mulf %23, %24 : vector<8x32xf32>
      %cst_19 = arith.constant dense<0.000000e+00> : vector<8x32xf32>
      %26 = tpu.matmul %25, %0, %cst_19 {dimension_numbers = #tpu.dot_dimension_numbers<[1], [0], [0], [1], [0, 0, 1, 1], [], []>} : vector<8x32xf32>, vector<32x32xf32>, vector<8x32xf32> -> vector<8x32xf32>
      %c0_20 = arith.constant 0 : index
      %c0_21 = arith.constant 0 : index
      %27 = vector.load %arg6[%c0_20, %c0_21] : memref<1x32xf32, #tpu.memory_space<vmem>>, vector<1x32xf32>
      %28 = vector.broadcast %27 : vector<1x32xf32> to vector<8x32xf32>
      %29 = arith.addf %26, %28 : vector<8x32xf32>
      %c0_22 = arith.constant 0 : index
      %c0_23 = arith.constant 0 : index
      %30 = vector.load %arg7[%c0_22, %c0_23] : memref<32x40xf32, #tpu.memory_space<vmem>>, vector<32x40xf32>
      %cst_24 = arith.constant dense<0.000000e+00> : vector<8x40xf32>
      %31 = tpu.matmul %29, %30, %cst_24 {dimension_numbers = #tpu.dot_dimension_numbers<[1], [0], [0], [1], [0, 0, 1, 1], [], []>} : vector<8x32xf32>, vector<32x40xf32>, vector<8x40xf32> -> vector<8x40xf32>
      %32 = vector.extract_strided_slice %31 {offsets = [0, 0], sizes = [8, 32], strides = [1, 1]} : vector<8x40xf32> to vector<8x32xf32>
      %33 = vector.extract_strided_slice %31 {offsets = [0, 32], sizes = [8, 8], strides = [1, 1]} : vector<8x40xf32> to vector<8x8xf32>
      %c0_25 = arith.constant 0 : index
      %c0_26 = arith.constant 0 : index
      %34 = vector.load %arg8[%c0_25, %c0_26] : memref<1x8xf32, #tpu.memory_space<vmem>>, vector<1x8xf32>
      %35 = vector.broadcast %34 : vector<1x8xf32> to vector<8x8xf32>
      %36 = arith.addf %33, %35 : vector<8x8xf32>
      %cst_27 = arith.constant dense<0xFF800000> : vector<8xf32>
      %37 = vector.multi_reduction <maximumf>, %36, %cst_27 [1] : vector<8x8xf32> to vector<8xf32>
      %38 = vector.shape_cast %37 : vector<8xf32> to vector<8x1xf32>
      %39 = vector.broadcast %38 : vector<8x1xf32> to vector<8x8xf32>
      %40 = arith.subf %36, %39 : vector<8x8xf32>
      %41 = math.exp %40 : vector<8x8xf32>
      %cst_28 = arith.constant dense<0.000000e+00> : vector<8xf32>
      %42 = vector.multi_reduction <add>, %41, %cst_28 [1] : vector<8x8xf32> to vector<8xf32>
      %43 = vector.shape_cast %42 : vector<8xf32> to vector<8x1xf32>
      %44 = vector.broadcast %43 : vector<8x1xf32> to vector<8x8xf32>
      %45 = arith.divf %41, %44 : vector<8x8xf32>
      %c0_29 = arith.constant 0 : index
      %c0_30 = arith.constant 0 : index
      %46 = vector.load %arg11[%c0_29, %c0_30] : memref<8x8xf32, #tpu.memory_space<vmem>>, vector<8x8xf32>
      tpu.vector_store %arg11[%c0_29, %c0_30], %45 {strides = array<i32>} : memref<8x8xf32, #tpu.memory_space<vmem>>, vector<8x8xf32>,
      %c0_31 = arith.constant 0 : index
      %c0_32 = arith.constant 0 : index
      %47 = vector.load %arg10[%c0_31, %c0_32] : memref<8x32xf32, #tpu.memory_space<vmem>>, vector<8x32xf32>
      tpu.vector_store %arg10[%c0_31, %c0_32], %32 {strides = array<i32>} : memref<8x32xf32, #tpu.memory_space<vmem>>, vector<8x32xf32>,
      %48 = arith.mulf %32, %29 : vector<8x32xf32>
      %cst_33 = arith.constant dense<0.000000e+00> : vector<8xf32>
      %49 = vector.multi_reduction <add>, %48, %cst_33 [1] : vector<8x32xf32> to vector<8xf32>
      %50 = vector.shape_cast %49 : vector<8xf32> to vector<8x1xf32>
      %c0_34 = arith.constant 0 : index
      %c0_35 = arith.constant 0 : index
      %51 = vector.load %arg12[%c0_34, %c0_35] : memref<8x1xf32, #tpu.memory_space<vmem>>, vector<8x1xf32>
      tpu.vector_store %arg12[%c0_34, %c0_35], %50 {strides = array<i32>} : memref<8x1xf32, #tpu.memory_space<vmem>>, vector<8x1xf32>,
    } else {
    }
    %c0_2 = arith.constant 0 : index
    %c0_3 = arith.constant 0 : index
    %c0_4 = arith.constant 0 : index
    %c0_5 = arith.constant 0 : index
    %4 = vector.load %arg3[%c0_2, %c0_3, %c0_4, %c0_5] : memref<3x8x16x32xbf16, #tpu.memory_space<vmem>>, vector<3x8x16x32xbf16>
    %5 = arith.extf %4 : vector<3x8x16x32xbf16> to vector<3x8x16x32xf32>
    %cst_6 = arith.constant dense<0.000000e+00> : vector<3x8x32xf32>
    %6 = vector.multi_reduction <add>, %5, %cst_6 [2] : vector<3x8x16x32xf32> to vector<3x8x32xf32>
    %cst_7 = arith.constant 6.250000e-02 : f32
    %7 = vector.broadcast %cst_7 : f32 to vector<3x8x32xf32>
    %8 = arith.mulf %6, %7 : vector<3x8x32xf32>
    %9 = vector.shape_cast %8 : vector<3x8x32xf32> to vector<24x32xf32>
    %cst_8 = arith.constant dense<0.000000e+00> : vector<24x32xf32>
    %10 = tpu.matmul %9, %0, %cst_8 {dimension_numbers = #tpu.dot_dimension_numbers<[1], [0], [0], [1], [0, 0, 1, 1], [], []>} : vector<24x32xf32>, vector<32x32xf32>, vector<24x32xf32> -> vector<24x32xf32>
    %c0_9 = arith.constant 0 : index
    %c0_10 = arith.constant 0 : index
    %11 = vector.load %arg6[%c0_9, %c0_10] : memref<1x32xf32, #tpu.memory_space<vmem>>, vector<1x32xf32>
    %12 = vector.broadcast %11 : vector<1x32xf32> to vector<24x32xf32>
    %13 = arith.addf %10, %12 : vector<24x32xf32>
    %14 = vector.shape_cast %13 : vector<24x32xf32> to vector<3x8x32xf32>
    %c3_i32 = arith.constant 3 : i32
    %15 = arith.muli %arg1, %c3_i32 : i32
    %16 = arith.index_cast %15 : i32 to index
    %c0_11 = arith.constant 0 : index
    %c0_12 = arith.constant 0 : index
    %17 = vector.load %arg13[%16, %c0_11, %c0_12] : memref<3x8x32xf32, #tpu.memory_space<vmem>>, vector<3x8x32xf32>
    tpu.vector_store %arg13[%16, %c0_11, %c0_12], %14 {strides = array<i32>} : memref<3x8x32xf32, #tpu.memory_space<vmem>>, vector<3x8x32xf32>,
    %c0_i32_13 = arith.constant 0 : i32
    %18 = arith.cmpi eq, %arg1, %c0_i32_13 : i32
    %19 = arith.extui %18 : i1 to i32
    %c0_i32_14 = arith.constant 0 : i32
    %20 = arith.cmpi ne, %19, %c0_i32_14 : i32
    scf.if %20 {
      %c0_15 = arith.constant 0 : index
      %c0_16 = arith.constant 0 : index
      %21 = vector.load %arg10[%c0_15, %c0_16] : memref<8x32xf32, #tpu.memory_space<vmem>>, vector<8x32xf32>
      %c0_17 = arith.constant 0 : index
      %c0_18 = arith.constant 0 : index
      %c0_19 = arith.constant 0 : index
      %22 = vector.load %arg13[%c0_17, %c0_18, %c0_19] : memref<3x8x32xf32, #tpu.memory_space<vmem>>, vector<3x8x32xf32>
      %23 = vector.shape_cast %21 : vector<8x32xf32> to vector<1x8x32xf32>
      %24 = vector.broadcast %23 : vector<1x8x32xf32> to vector<3x8x32xf32>
      %25 = arith.mulf %22, %24 : vector<3x8x32xf32>
      %cst_20 = arith.constant dense<0.000000e+00> : vector<3x8xf32>
      %26 = vector.multi_reduction <add>, %25, %cst_20 [2] : vector<3x8x32xf32> to vector<3x8xf32>
      %c0_21 = arith.constant 0 : index
      %c0_22 = arith.constant 0 : index
      %27 = vector.load %arg12[%c0_21, %c0_22] : memref<8x1xf32, #tpu.memory_space<vmem>>, vector<8x1xf32>
      %28 = tpu.transpose %26, [1, 0] : vector<3x8xf32> -> vector<8x3xf32>
      %29 = tpu.concatenate %27, %28 in 1 : vector<8x1xf32>, vector<8x3xf32> -> vector<8x4xf32>
      %cst_23 = arith.constant dense<0xFF800000> : vector<8xf32>
      %30 = vector.multi_reduction <maximumf>, %29, %cst_23 [1] : vector<8x4xf32> to vector<8xf32>
      %31 = vector.shape_cast %30 : vector<8xf32> to vector<8x1xf32>
      %32 = vector.broadcast %31 : vector<8x1xf32> to vector<8x4xf32>
      %33 = arith.subf %29, %32 : vector<8x4xf32>
      %34 = math.exp %33 : vector<8x4xf32>
      %cst_24 = arith.constant dense<0.000000e+00> : vector<8xf32>
      %35 = vector.multi_reduction <add>, %34, %cst_24 [1] : vector<8x4xf32> to vector<8xf32>
      %36 = vector.shape_cast %35 : vector<8xf32> to vector<8x1xf32>
      %37 = vector.broadcast %36 : vector<8x1xf32> to vector<8x4xf32>
      %38 = arith.divf %34, %37 : vector<8x4xf32>
      %39 = vector.extract_strided_slice %38 {offsets = [0, 0], sizes = [8, 1], strides = [1, 1]} : vector<8x4xf32> to vector<8x1xf32>
      %c0_25 = arith.constant 0 : index
      %c0_26 = arith.constant 0 : index
      %40 = vector.load %arg11[%c0_25, %c0_26] : memref<8x8xf32, #tpu.memory_space<vmem>>, vector<8x8xf32>
      %41 = vector.broadcast %39 : vector<8x1xf32> to vector<8x8xf32>
      %42 = arith.mulf %41, %40 : vector<8x8xf32>
      %43 = tpu.iota {dimensions = array<i32: 2>} : vector<8x3x8xi32>
      %c0_27 = arith.constant 0 : index
      %c0_28 = arith.constant 0 : index
      %44 = vector.load %arg4[%c0_27, %c0_28] : memref<8x3xi32, #tpu.memory_space<vmem>>, vector<8x3xi32>
      %45 = vector.shape_cast %44 : vector<8x3xi32> to vector<8x3x1xi32>
      %46 = vector.broadcast %45 : vector<8x3x1xi32> to vector<8x3x8xi32>
      %47 = arith.cmpi eq, %46, %43 : vector<8x3x8xi32>
      %48 = arith.extui %47 : vector<8x3x8xi1> to vector<8x3x8xi32>
      %49 = arith.sitofp %48 : vector<8x3x8xi32> to vector<8x3x8xf32>
      %50 = vector.extract_strided_slice %38 {offsets = [0, 0], sizes = [8, 3], strides = [1, 1]} : vector<8x4xf32> to vector<8x3xf32>
      %51 = vector.shape_cast %50 : vector<8x3xf32> to vector<8x3x1xf32>
      %52 = vector.broadcast %51 : vector<8x3x1xf32> to vector<8x3x8xf32>
      %53 = arith.mulf %52, %49 : vector<8x3x8xf32>
      %cst_29 = arith.constant dense<0.000000e+00> : vector<8x8xf32>
      %54 = vector.multi_reduction <add>, %53, %cst_29 [1] : vector<8x3x8xf32> to vector<8x8xf32>
      %55 = arith.addf %42, %54 : vector<8x8xf32>
      %c0_30 = arith.constant 0 : index
      %c0_31 = arith.constant 0 : index
      %56 = vector.load %arg9[%c0_30, %c0_31] : memref<8x8xf32, #tpu.memory_space<vmem>>, vector<8x8xf32>
      tpu.vector_store %arg9[%c0_30, %c0_31], %55 {strides = array<i32>} : memref<8x8xf32, #tpu.memory_space<vmem>>, vector<8x8xf32>,
    } else {
    }
    return
  }
  func.func @transform_0(%arg0: i32, %arg1: i32) -> (i32, i32, i32) {
    %c0_i32 = arith.constant 0 : i32
    %c0_i32_0 = arith.constant 0 : i32
    %c0_i32_1 = arith.constant 0 : i32
    return %arg0, %c0_i32, %c0_i32_0 : i32, i32, i32
  }
  func.func @transform_1(%arg0: i32, %arg1: i32) -> (i32, i32, i32, i32) {
    %c0_i32 = arith.constant 0 : i32
    %c0_i32_0 = arith.constant 0 : i32
    %c0_i32_1 = arith.constant 0 : i32
    return %arg1, %arg0, %c0_i32, %c0_i32_0 : i32, i32, i32, i32
  }
  func.func @transform_2(%arg0: i32, %arg1: i32) -> (i32, i32) {
    %c0_i32 = arith.constant 0 : i32
    %c0_i32_0 = arith.constant 0 : i32
    return %arg0, %c0_i32 : i32, i32
  }
  func.func @transform_3(%arg0: i32, %arg1: i32) -> (i32, i32) {
    %c0_i32 = arith.constant 0 : i32
    %c0_i32_0 = arith.constant 0 : i32
    %c0_i32_1 = arith.constant 0 : i32
    return %c0_i32, %c0_i32_0 : i32, i32
  }
  func.func @transform_4(%arg0: i32, %arg1: i32) -> (i32, i32) {
    %c0_i32 = arith.constant 0 : i32
    %c0_i32_0 = arith.constant 0 : i32
    %c0_i32_1 = arith.constant 0 : i32
    return %c0_i32, %c0_i32_0 : i32, i32
  }
  func.func @transform_5(%arg0: i32, %arg1: i32) -> (i32, i32) {
    %c0_i32 = arith.constant 0 : i32
    %c0_i32_0 = arith.constant 0 : i32
    %c0_i32_1 = arith.constant 0 : i32
    return %c0_i32, %c0_i32_0 : i32, i32
  }
  func.func @transform_6(%arg0: i32, %arg1: i32) -> (i32, i32) {
    %c0_i32 = arith.constant 0 : i32
    %c0_i32_0 = arith.constant 0 : i32
    %c0_i32_1 = arith.constant 0 : i32
    return %c0_i32, %c0_i32_0 : i32, i32
  }
  func.func @transform_7(%arg0: i32, %arg1: i32) -> (i32, i32) {
    %c0_i32 = arith.constant 0 : i32
    %c0_i32_0 = arith.constant 0 : i32
    return %arg0, %c0_i32 : i32, i32
  }
}

</mosaic_0001>

<bundles_post_ra>
// kernel: tpu_custom_call.1
= control target key start
LH: loop header
LB: loop body
LE: loop exit
PB: predicated region body
PF: predicated region fallthrough
CT: control target
= control target key end

     0   :  { %12 = vsyncpa [#allocation7], 0  ;;  %s1687_s0 = inlined_call_operand.hbm [shape: bf16[8,16,32], index: 0, kind: input, shape index: {}]   ;;  %s1688_s1 = inlined_call_operand.hbm [shape: bf16[3,8,16,32], index: 1, kind: input, shape index: {}]   ;;  %s1689_s2 = inlined_call_operand.vmem [shape: s32[8,3], index: 2, kind: input, shape index: {}]   ;;  %s1690_s3 = inlined_call_operand.hbm [shape: f32[32,32], index: 3, kind: input, shape index: {}]   ;;  %s1691_s4 = inlined_call_operand.vmem [shape: f32[1,32], index: 4, kind: input, shape index: {}]   ;;  %s1692_s5 = inlined_call_operand.hbm [shape: f32[32,40], index: 5, kind: input, shape index: {}]   ;;  %s1693_s6 = inlined_call_operand.vmem [shape: f32[1,8], index: 6, kind: input, shape index: {}]   ;;  %s1694_s7 = inlined_call_operand.hbm [shape: f32[8,8], index: 7, kind: output, shape index: {}]  }
   0x1   :  { %13 = vsyncpa [#allocation10], 0 }
   0x2   :  { %14 = vsyncpa [#allocation13], 0 }
   0x3   :  { %15 = vsyncpa [#allocation8], 0  ;;  %s33_s26 = sshll.u32 %s1688_s1, 4  ;;  %s1440_s27 = smov [#allocation9]   ;;  %s34_s26 = int_to_ptr.hbm [resolvable:$true] %s33_s26 }
   0x4   :  { %s35_s28 = sshll.u32 %s1440_s27, 4  ;;  %s20_s8 = sshll.u32 %s1687_s0, 4  ;;  %s36_s28 = int_to_ptr.vmem [resolvable:$true] %s35_s28  ;;  %s21_s8 = int_to_ptr.hbm [resolvable:$true] %s20_s8 }
   0x5   :  { %s1441_s9 = smov 64   ;;  %s1442_s10 = smov 4  }
   0x6   :  { %41 = dma.hbm_to_vmem [thread:$0]  %s34_s26, 3072, %s36_s28, [#allocation10], %s1441_s9, %s1441_s9, %s1442_s10  }
   0x7   :  { %s1443_s11 = smov [#allocation6]   ;;  %s48_s15 = sshll.u32 %s1690_s3, 4  ;;  %s49_s15 = int_to_ptr.hbm [resolvable:$true] %s48_s15 }
   0x8   :  { %s22_s12 = sshll.u32 %s1443_s11, 4  ;;  %s1444_s1 = smov [#allocation11]   ;;  %s23_s12 = int_to_ptr.vmem [resolvable:$true] %s22_s12 }
   0x9   :  { %28 = dma.hbm_to_vmem [thread:$0]  %s21_s8, 1024, %s23_s12, [#allocation7], %s1441_s9, %s1441_s9, %s1442_s10  }
   0xa   :  { %s50_s16 = sshll.u32 %s1444_s1, 4  ;;  %s63_s0 = sshll.u32 %s1692_s5, 4  ;;  %s51_s16 = int_to_ptr.vmem [resolvable:$true] %s50_s16  ;;  %s64_s0 = int_to_ptr.hbm [resolvable:$true] %s63_s0 }
   0xb   :  { %s1445_s19 = smov 128   ;;  %s1446_s20 = smov 8  }
   0xc   :  { %56 = dma.hbm_to_vmem [thread:$0]  %s49_s15, 512, %s51_s16, [#allocation10], %s1445_s19, %s1445_s19, %s1446_s20  }
   0xd   :  { %s1447_s21 = smov [#allocation12]  }
   0xe   :  { %s65_s22 = sshll.u32 %s1447_s21, 4  ;;  %s66_s22 = int_to_ptr.vmem [resolvable:$true] %s65_s22 }
   0xf   :  { %71 = dma.hbm_to_vmem [thread:$0]  %s64_s0, 512, %s66_s22, [#allocation13], %s1445_s19, %s1445_s19, %s1446_s20  }
  0x10   :  { %1432 = dma.done.wait [#allocation7], 1024  }
  0x11   :  { %1433 = vsyncadd [#allocation7], 4294966272 }
  0x12   :  { %1434 = dma.done.wait [#allocation10], 3584  }
  0x13   :  { %1435 = vsyncadd [#allocation10], 4294963712 }
  0x14   :  { %1436 = dma.done.wait [#allocation13], 512  }
  0x15   :  { %1437 = vsyncadd [#allocation13], 4294966784  ;;  %v93_v0 = vld [vmem:[#allocation11 + $0x18] sm:$0xff]  ;;  %v92_v1 = vld [vmem:[#allocation11 + $0x10] sm:$0xff]  ;;  %vm130_vm0 = vcmask 261120   ;;  %vm223_vm1 = vcmask 1041409  }
  0x16   :  { %251 = vmatpush.msra.mxu0 %v93_v0  ;;  %v91_v2 = vld [vmem:[#allocation11 + $0x8] sm:$0xff]  ;;  %v1121_v3 = vld [vmem:[#allocation6] sm:$0xff]   ;;  %1278 = vmatpush.msra.mxu3 %v93_v0  ;;  %v1249_v9 = vld [vmem:[#allocation6 + $0x10] sm:$0xff]   ;;  %vm225_vm2 = vcmask 1042434   ;;  %vm227_vm3 = vcmask 1043459   ;;  %vm229_vm4 = vcmask 1044484  }
  0x17   :  { %v1248_v4 = vld [vmem:[#allocation6 + $0x8] sm:$0xff]   ;;  %v1122_v5 = vunpack.c.l.bf16 %v1121_v3  ;;  %v1123_v6 = vunpack.c.h.bf16 %v1121_v3  ;;  %v1250_v10 = vld [vmem:[#allocation6 + $0x18] sm:$0xff]   ;;  %v1251_v11 = vld [vmem:[#allocation6 + $0x20] sm:$0xff]   ;;  %746 = vmatpush.msra.mxu2 %v93_v0  ;;  %v1130_v12 = vunpack.c.l.bf16 %v1249_v9  ;;  %v1131_v13 = vunpack.c.h.bf16 %v1249_v9  ;;  %s1448_s26 = smov 32   ;;  %s1450_s27 = smov 1  }
  0x18   :  { %v1126_v7 = vunpack.c.l.bf16 %v1248_v4  ;;  %v1127_v8 = vunpack.c.h.bf16 %v1248_v4  ;;  %252 = vmatpush.msra.mxu0 %v92_v1  ;;  %v1134_v14 = vunpack.c.l.bf16 %v1250_v10  ;;  %v1135_v15 = vunpack.c.h.bf16 %v1250_v10  ;;  %v1252_v16 = vld [vmem:[#allocation6 + $0x28] sm:$0xff]   ;;  %v1253_v17 = vld [vmem:[#allocation6 + $0x30] sm:$0xff]   ;;  %v1506_v18 = vld [vmem:[#allocation6 + $0x38] sm:$0xff]   ;;  %1279 = vmatpush.msra.mxu3 %v92_v1  ;;  %s1095_s10 = sshll.u32 %s1694_s7, 4  ;;  %s1096_s10 = int_to_ptr.hbm [resolvable:$true] %s1095_s10 }
  0x19   :  { %v90_v19 = vld [vmem:[#allocation11] sm:$0xff]  ;;  %v1138_v20 = vunpack.c.l.bf16 %v1251_v11  ;;  %v1139_v21 = vunpack.c.h.bf16 %v1251_v11  ;;  %v1142_v22 = vunpack.c.l.bf16 %v1252_v16  ;;  %v1143_v23 = vunpack.c.h.bf16 %v1252_v16  ;;  %747 = vmatpush.msra.mxu2 %v92_v1 }
  0x1a   :  { %253 = vmatpush.msra.mxu0 %v91_v2  ;;  %v1146_v24 = vunpack.c.l.bf16 %v1253_v17  ;;  %v1147_v25 = vunpack.c.h.bf16 %v1253_v17  ;;  %v1150_v26 = vunpack.c.l.bf16 %v1506_v18  ;;  %v1151_v27 = vunpack.c.h.bf16 %v1506_v18  ;;  %1280 = vmatpush.msra.mxu3 %v91_v2 }
  0x1b   :  { %v131_v28 = vsel %vm130_vm0, %v1122_v5, 0.0  ;;  %v132_v29 = vsel %vm130_vm0, %v1123_v6, 0.0  ;;  %v140_v30 = vsel %vm130_vm0, %v1126_v7, 0.0  ;;  %v141_v31 = vsel %vm130_vm0, %v1127_v8, 0.0  ;;  %748 = vmatpush.msra.mxu2 %v91_v2 }
  0x1c   :  { %254 = vmatpush.msra.mxu0 %v90_v19  ;;  %v133_v32 = vadd.f32 %v132_v29, %v131_v28  ;;  %v142_v33 = vadd.f32 %v141_v31, %v140_v30  ;;  %v149_v34 = vsel %vm130_vm0, %v1130_v12, 0.0  ;;  %v150_v35 = vsel %vm130_vm0, %v1131_v13, 0.0  ;;  %1281 = vmatpush.msra.mxu3 %v90_v19 }
  0x1d   :  { %v151_v36 = vadd.f32 %v150_v35, %v149_v34  ;;  %v158_v37 = vsel %vm130_vm0, %v1134_v14, 0.0  ;;  %v159_v38 = vsel %vm130_vm0, %v1135_v15, 0.0  ;;  %v167_v39 = vsel %vm130_vm0, %v1138_v20, 0.0  ;;  %749 = vmatpush.msra.mxu2 %v90_v19 }
  0x1e   :  { %v134_v40 = vrot.slane %v133_v32, 4  ;;  %v143_v41 = vrot.slane %v142_v33, 4  ;;  %v160_v42 = vadd.f32 %v159_v38, %v158_v37  ;;  %v168_v43 = vsel %vm130_vm0, %v1139_v21, 0.0 }
  0x1f   :  { %v152_v44 = vrot.slane %v151_v36, 4  ;;  %v169_v45 = vadd.f32 %v168_v43, %v167_v39  ;;  %v176_v46 = vsel %vm130_vm0, %v1142_v22, 0.0  ;;  %v177_v47 = vsel %vm130_vm0, %v1143_v23, 0.0  ;;  %v1265_v43 = vld [vmem:[#allocation9 + $0x58] sm:$0xff]  }
  0x20   :  { %v135_v48 = vadd.f32 %v134_v40, %v133_v32  ;;  %v144_v49 = vadd.f32 %v143_v41, %v142_v33  ;;  %v161_v50 = vrot.slane %v160_v42, 4  ;;  %v178_v51 = vadd.f32 %v177_v47, %v176_v46  ;;  %v1263_v33 = vld [vmem:[#allocation9 + $0x48] sm:$0xff]  }
  0x21   :  { %v153_v52 = vadd.f32 %v152_v44, %v151_v36  ;;  %v170_v53 = vrot.slane %v169_v45, 4  ;;  %v185_v54 = vsel %vm130_vm0, %v1146_v24, 0.0  ;;  %v186_v55 = vsel %vm130_vm0, %v1147_v25, 0.0  ;;  %v1262_v24 = vld [vmem:[#allocation9 + $0x40] sm:$0xff]  }
  0x22   :  { %v136_v56 = vrot.slane %v135_v48, 2  ;;  %v145_v57 = vrot.slane %v144_v49, 2  ;;  %v162_v58 = vadd.f32 %v161_v50, %v160_v42  ;;  %v179_v59 = vrot.slane %v178_v51, 4  ;;  %v1264_v42 = vld [vmem:[#allocation9 + $0x50] sm:$0xff]  }
  0x23   :  { %v154_v60 = vrot.slane %v153_v52, 2  ;;  %v171_v61 = vadd.f32 %v170_v53, %v169_v45  ;;  %v187_v62 = vadd.f32 %v186_v55, %v185_v54  ;;  %v194_v63 = vsel %vm130_vm0, %v1150_v26, 0.0  ;;  %v1267_v53 = vld [vmem:[#allocation9 + $0x68] sm:$0xff]   ;;  %v1268_v54 = vld [vmem:[#allocation9 + $0x70] sm:$0xff]  }
  0x24   :  { %v137_v0 = vadd.f32 %v136_v56, %v135_v48  ;;  %v146_v1 = vadd.f32 %v145_v57, %v144_v49  ;;  %v163_v2 = vrot.slane %v162_v58, 2  ;;  %v180_v3 = vadd.f32 %v179_v59, %v178_v51  ;;  %v1266_v48 = vld [vmem:[#allocation9 + $0x60] sm:$0xff]   ;;  %v1269_v59 = vld [vmem:[#allocation9 + $0x78] sm:$0xff]  }
  0x25   :  { %v155_v4 = vadd.f32 %v154_v60, %v153_v52  ;;  %v172_v5 = vrot.slane %v171_v61, 2  ;;  %v188_v6 = vrot.slane %v187_v62, 4  ;;  %v195_v7 = vsel %vm130_vm0, %v1151_v27, 0.0 }
  0x26   :  { %vm231_vm5 = vcmask 1045509   ;;  %v138_v8 = vrot.slane %v137_v0, 1  ;;  %v147_v9 = vrot.slane %v146_v1, 1  ;;  %v164_v10 = vadd.f32 %v163_v2, %v162_v58 }
  0x27   :  { %v181_v11 = vrot.slane %v180_v3, 2  ;;  %v156_v12 = vrot.slane %v155_v4, 1  ;;  %v173_v13 = vadd.f32 %v172_v5, %v171_v61  ;;  %v189_v14 = vadd.f32 %v188_v6, %v187_v62 }
  0x28   :  { %v196_v15 = vadd.f32 %v195_v7, %v194_v63  ;;  %v139_v16 = vadd.f32 %v138_v8, %v137_v0  ;;  %v148_v17 = vadd.f32 %v147_v9, %v146_v1  ;;  %v165_v18 = vrot.slane %v164_v10, 1 }
  0x29   :  { %v182_v19 = vadd.f32 %v181_v11, %v180_v3  ;;  %vm233_vm6 = vcmask 1046534   ;;  %v157_v20 = vadd.f32 %v156_v12, %v155_v4  ;;  %v174_v21 = vrot.slane %v173_v13, 1 }
  0x2a   :  { %v190_v22 = vrot.slane %v189_v14, 2  ;;  %v197_v23 = vrot.slane %v196_v15, 4  ;;  %v166_v25 = vadd.f32 %v165_v18, %v164_v10  ;;  %v203_v27 = vmul.f32 0.0625, %v139_v16 }
  0x2b   :  { %v183_v26 = vrot.slane %v182_v19, 1  ;;  %v204_v28 = vmul.f32 0.0625, %v148_v17  ;;  %v175_v29 = vadd.f32 %v174_v21, %v173_v13  ;;  %v205_v32 = vmul.f32 0.0625, %v157_v20 }
  0x2c   :  { %v191_v30 = vadd.f32 %v190_v22, %v189_v14  ;;  %v198_v31 = vadd.f32 %v197_v23, %v196_v15  ;;  %v206_v35 = vmul.f32 0.0625, %v166_v25  ;;  %vm235_vm7 = vcmask 1047559  }
  0x2d   :  { %v184_v34 = vadd.f32 %v183_v26, %v182_v19  ;;  %v224_v36 = vsel %vm223_vm1, %v204_v28, %v203_v27  ;;  %v1186_v37 = vunpack.c.l.bf16 %v1262_v24  ;;  %v207_v40 = vmul.f32 0.0625, %v175_v29 }
  0x2e   :  { %v192_v38 = vrot.slane %v191_v30, 1  ;;  %v199_v39 = vrot.slane %v198_v31, 2  ;;  %v226_v41 = vsel %vm225_vm2, %v205_v32, %v224_v36  ;;  %v1187_v46 = vunpack.c.h.bf16 %v1262_v24 }
  0x2f   :  { %v208_v44 = vmul.f32 0.0625, %v184_v34  ;;  %v228_v45 = vsel %vm227_vm3, %v206_v35, %v226_v41  ;;  %v1190_v47 = vunpack.c.l.bf16 %v1263_v33  ;;  %v1191_v52 = vunpack.c.h.bf16 %v1263_v33 }
  0x30   :  { %v193_v49 = vadd.f32 %v192_v38, %v191_v30  ;;  %v200_v50 = vadd.f32 %v199_v39, %v198_v31  ;;  %v230_v51 = vsel %vm229_vm4, %v207_v40, %v228_v45  ;;  %v1194_v56 = vunpack.c.l.bf16 %v1264_v42 }
  0x31   :  { %v232_v55 = vsel %vm231_vm5, %v208_v44, %v230_v51  ;;  %v1195_v57 = vunpack.c.h.bf16 %v1264_v42  ;;  %v1198_v58 = vunpack.c.l.bf16 %v1265_v43  ;;  %v1199_v62 = vunpack.c.h.bf16 %v1265_v43 }
  0x32   :  { %v201_v60 = vrot.slane %v200_v50, 1  ;;  %v209_v61 = vmul.f32 0.0625, %v193_v49  ;;  %v1202_v63 = vunpack.c.l.bf16 %v1266_v48  ;;  %v1203_v0 = vunpack.c.h.bf16 %v1266_v48 }
  0x33   :  { %v1206_v1 = vunpack.c.l.bf16 %v1267_v53  ;;  %v1207_v2 = vunpack.c.h.bf16 %v1267_v53  ;;  %v1210_v3 = vunpack.c.l.bf16 %v1268_v54  ;;  %v1211_v6 = vunpack.c.h.bf16 %v1268_v54 }
  0x34   :  { %v202_v4 = vadd.f32 %v201_v60, %v200_v50  ;;  %v234_v5 = vsel %vm233_vm6, %v209_v61, %v232_v55  ;;  %v1214_v7 = vunpack.c.l.bf16 %v1269_v59  ;;  %v1215_v8 = vunpack.c.h.bf16 %v1269_v59 }
  0x35   :  { %v504_v9 = vsel %vm130_vm0, %v1186_v37, 0.0  ;;  %v505_v10 = vsel %vm130_vm0, %v1187_v46, 0.0  ;;  %v513_v11 = vsel %vm130_vm0, %v1190_v47, 0.0  ;;  %v514_v14 = vsel %vm130_vm0, %v1191_v52, 0.0 }
  0x36   :  { %v210_v12 = vmul.f32 0.0625, %v202_v4  ;;  %v506_v13 = vadd.f32 %v505_v10, %v504_v9  ;;  %v522_v15 = vsel %vm130_vm0, %v1194_v56, 0.0  ;;  %v515_v16 = vadd.f32 %v514_v14, %v513_v11  ;;  %v1153_v4 = vld [vmem:[#allocation9] sm:$0xff]  }
  0x37   :  { %v523_v17 = vsel %vm130_vm0, %v1195_v57, 0.0  ;;  %v531_v18 = vsel %vm130_vm0, %v1198_v58, 0.0  ;;  %v532_v19 = vsel %vm130_vm0, %v1199_v62, 0.0  ;;  %v540_v25 = vsel %vm130_vm0, %v1202_v63, 0.0 }
  0x38   :  { %v236_v20 = vsel %vm235_vm7, %v210_v12, %v234_v5  ;;  %v507_v21 = vrot.slane %v506_v13, 4  ;;  %v524_v22 = vadd.f32 %v523_v17, %v522_v15  ;;  %v533_v23 = vadd.f32 %v532_v19, %v531_v18 }
  0x39   :  { %1107 = vmatmul.msk.f32.vlgmr.msra.gmra.mxu0 %vm130_vm0, %v236_v20  ;;  %v516_v24 = vrot.slane %v515_v16, 4  ;;  %v541_v26 = vsel %vm130_vm0, %v1203_v0, 0.0  ;;  %v549_v27 = vsel %vm130_vm0, %v1206_v1, 0.0  ;;  %v550_v33 = vsel %vm130_vm0, %v1207_v2, 0.0 }
  0x3a   :  { %v508_v28 = vadd.f32 %v507_v21, %v506_v13  ;;  %v525_v29 = vrot.slane %v524_v22, 4  ;;  %v534_v30 = vrot.slane %v533_v23, 4  ;;  %v542_v31 = vadd.f32 %v541_v26, %v540_v25  ;;  %v1255_v13 = vld [vmem:[#allocation9 + $0x8] sm:$0xff]  }
  0x3b   :  { %v517_v32 = vadd.f32 %v516_v24, %v515_v16  ;;  %v558_v34 = vsel %vm130_vm0, %v1210_v3, 0.0  ;;  %v559_v35 = vsel %vm130_vm0, %v1211_v6, 0.0  ;;  %v551_v41 = vadd.f32 %v550_v33, %v549_v27  ;;  %v1257_v27 = vld [vmem:[#allocation9 + $0x18] sm:$0xff]   ;;  %v1259_v33 = vld [vmem:[#allocation9 + $0x28] sm:$0xff]  }
  0x3c   :  { %v509_v36 = vrot.slane %v508_v28, 2  ;;  %v526_v37 = vadd.f32 %v525_v29, %v524_v22  ;;  %v535_v38 = vadd.f32 %v534_v30, %v533_v23  ;;  %v543_v39 = vrot.slane %v542_v31, 4  ;;  %v1256_v22 = vld [vmem:[#allocation9 + $0x10] sm:$0xff]  }
  0x3d   :  { %v518_v40 = vrot.slane %v517_v32, 2  ;;  %v560_v42 = vadd.f32 %v559_v35, %v558_v34  ;;  %v567_v43 = vsel %vm130_vm0, %v1214_v7, 0.0  ;;  %v552_v49 = vrot.slane %v551_v41, 4 }
  0x3e   :  { %v510_v44 = vadd.f32 %v509_v36, %v508_v28  ;;  %v527_v45 = vrot.slane %v526_v37, 2  ;;  %v536_v46 = vrot.slane %v535_v38, 2  ;;  %v544_v47 = vadd.f32 %v543_v39, %v542_v31 }
  0x3f   :  { %v519_v48 = vadd.f32 %v518_v40, %v517_v32  ;;  %v561_v50 = vrot.slane %v560_v42, 4  ;;  %v568_v51 = vsel %vm130_vm0, %v1215_v8, 0.0  ;;  %v553_v57 = vadd.f32 %v552_v49, %v551_v41  ;;  %v1258_v32 = vld [vmem:[#allocation9 + $0x20] sm:$0xff]  }
  0x40   :  { %v511_v52 = vrot.slane %v510_v44, 1  ;;  %v528_v53 = vadd.f32 %v527_v45, %v526_v37  ;;  %v537_v54 = vadd.f32 %v536_v46, %v535_v38  ;;  %v545_v55 = vrot.slane %v544_v47, 2  ;;  %v1260_v38 = vld [vmem:[#allocation9 + $0x30] sm:$0xff]  }
  0x41   :  { %v520_v56 = vrot.slane %v519_v48, 1  ;;  %v562_v58 = vadd.f32 %v561_v50, %v560_v42  ;;  %v569_v59 = vadd.f32 %v568_v51, %v567_v43  ;;  %v554_v1 = vrot.slane %v553_v57, 2  ;;  %v1261_v43 = vld [vmem:[#allocation9 + $0x38] sm:$0xff]  }
  0x42   :  { %v512_v60 = vadd.f32 %v511_v52, %v510_v44  ;;  %v529_v61 = vrot.slane %v528_v53, 1  ;;  %v538_v62 = vrot.slane %v537_v54, 1  ;;  %v546_v63 = vadd.f32 %v545_v55, %v544_v47 }
  0x43   :  { %v521_v0 = vadd.f32 %v520_v56, %v519_v48  ;;  %v563_v2 = vrot.slane %v562_v58, 2  ;;  %v570_v3 = vrot.slane %v569_v59, 4  ;;  %v555_v9 = vadd.f32 %v554_v1, %v553_v57 }
  0x44   :  { %v530_v5 = vadd.f32 %v529_v61, %v528_v53  ;;  %v539_v6 = vadd.f32 %v538_v62, %v537_v54  ;;  %v547_v7 = vrot.slane %v546_v63, 1  ;;  %v656_v8 = vmul.f32 0.0625, %v512_v60 }
  0x45   :  { %v564_v10 = vadd.f32 %v563_v2, %v562_v58  ;;  %v571_v11 = vadd.f32 %v570_v3, %v569_v59  ;;  %v657_v12 = vmul.f32 0.0625, %v521_v0  ;;  %v1154_v17 = vunpack.c.l.bf16 %v1153_v4 }
  0x46   :  { %v548_v14 = vadd.f32 %v547_v7, %v546_v63  ;;  %v658_v15 = vmul.f32 0.0625, %v530_v5  ;;  %v659_v16 = vmul.f32 0.0625, %v539_v6  ;;  %v556_v18 = vrot.slane %v555_v9, 1 }
  0x47   :  { %v565_v19 = vrot.slane %v564_v10, 1  ;;  %v572_v20 = vrot.slane %v571_v11, 2  ;;  %v714_v21 = vsel %vm223_vm1, %v657_v12, %v656_v8  ;;  %v1155_v25 = vunpack.c.h.bf16 %v1153_v4 }
  0x48   :  { %v660_v23 = vmul.f32 0.0625, %v548_v14  ;;  %v715_v24 = vsel %vm225_vm2, %v658_v15, %v714_v21  ;;  %v1158_v26 = vunpack.c.l.bf16 %v1255_v13  ;;  %v557_v28 = vadd.f32 %v556_v18, %v555_v9 }
  0x49   :  { %v566_v29 = vadd.f32 %v565_v19, %v564_v10  ;;  %v573_v30 = vadd.f32 %v572_v20, %v571_v11  ;;  %v716_v31 = vsel %vm227_vm3, %v659_v16, %v715_v24  ;;  %v1159_v35 = vunpack.c.h.bf16 %v1255_v13 }
  0x4a   :  { %v717_v34 = vsel %vm229_vm4, %v660_v23, %v716_v31  ;;  %v1162_v36 = vunpack.c.l.bf16 %v1256_v22  ;;  %v1163_v37 = vunpack.c.h.bf16 %v1256_v22  ;;  %v661_v40 = vmul.f32 0.0625, %v557_v28 }
  0x4b   :  { %v574_v39 = vrot.slane %v573_v30, 1  ;;  %v662_v41 = vmul.f32 0.0625, %v566_v29  ;;  %v1166_v42 = vunpack.c.l.bf16 %v1257_v27  ;;  %v1167_v44 = vunpack.c.h.bf16 %v1257_v27 }
  0x4c   :  { %v1170_v45 = vunpack.c.l.bf16 %v1258_v32  ;;  %v1171_v46 = vunpack.c.h.bf16 %v1258_v32  ;;  %v1174_v47 = vunpack.c.l.bf16 %v1259_v33  ;;  %v718_v49 = vsel %vm231_vm5, %v661_v40, %v717_v34 }
  0x4d   :  { %v575_v48 = vadd.f32 %v574_v39, %v573_v30  ;;  %v1175_v50 = vunpack.c.h.bf16 %v1259_v33  ;;  %v1178_v51 = vunpack.c.l.bf16 %v1260_v38  ;;  %v719_v52 = vsel %vm233_vm6, %v662_v41, %v718_v49 }
  0x4e   :  { %v1179_v53 = vunpack.c.h.bf16 %v1260_v38  ;;  %v1182_v54 = vunpack.c.l.bf16 %v1261_v43  ;;  %v1183_v55 = vunpack.c.h.bf16 %v1261_v43  ;;  %v432_v57 = vsel %vm130_vm0, %v1154_v17, 0.0 }
  0x4f   :  { %v663_v56 = vmul.f32 0.0625, %v575_v48  ;;  %v433_v58 = vsel %vm130_vm0, %v1155_v25, 0.0  ;;  %v441_v59 = vsel %vm130_vm0, %v1158_v26, 0.0  ;;  %v442_v61 = vsel %vm130_vm0, %v1159_v35, 0.0 }
  0x50   :  { %v434_v60 = vadd.f32 %v433_v58, %v432_v57  ;;  %v450_v62 = vsel %vm130_vm0, %v1162_v36, 0.0  ;;  %v451_v63 = vsel %vm130_vm0, %v1163_v37, 0.0  ;;  %v443_v1 = vadd.f32 %v442_v61, %v441_v59 }
  0x51   :  { %v720_v0 = vsel %vm235_vm7, %v663_v56, %v719_v52  ;;  %v452_v2 = vadd.f32 %v451_v63, %v450_v62  ;;  %v459_v3 = vsel %vm130_vm0, %v1166_v42, 0.0  ;;  %v460_v5 = vsel %vm130_vm0, %v1167_v44, 0.0  ;;  %v1270_v52 = vld [vmem:[#allocation9 + $0x80] sm:$0xff]  }
  0x52   :  { %1110 = vmatmul.msk.f32.vlgmr.msra.gmra.mxu3 %vm130_vm0, %v720_v0  ;;  %v435_v4 = vrot.slane %v434_v60, 4  ;;  %v468_v6 = vsel %vm130_vm0, %v1170_v45, 0.0  ;;  %v469_v7 = vsel %vm130_vm0, %v1171_v46, 0.0  ;;  %v444_v8 = vrot.slane %v443_v1, 4 }
  0x53   :  { %v453_v9 = vrot.slane %v452_v2, 4  ;;  %v461_v10 = vadd.f32 %v460_v5, %v459_v3  ;;  %v470_v11 = vadd.f32 %v469_v7, %v468_v6  ;;  %v477_v13 = vsel %vm130_vm0, %v1174_v47, 0.0 }
  0x54   :  { %v436_v12 = vadd.f32 %v435_v4, %v434_v60  ;;  %v478_v14 = vsel %vm130_vm0, %v1175_v50, 0.0  ;;  %v486_v15 = vsel %vm130_vm0, %v1178_v51, 0.0  ;;  %v445_v16 = vadd.f32 %v444_v8, %v443_v1  ;;  %v1271_v1 = vld [vmem:[#allocation9 + $0x88] sm:$0xff]  }
  0x55   :  { %v454_v17 = vadd.f32 %v453_v9, %v452_v2  ;;  %v462_v18 = vrot.slane %v461_v10, 4  ;;  %v471_v19 = vrot.slane %v470_v11, 4  ;;  %v479_v21 = vadd.f32 %v478_v14, %v477_v13  ;;  %v1272_v2 = vld [vmem:[#allocation9 + $0x90] sm:$0xff]  }
  0x56   :  { %v437_v20 = vrot.slane %v436_v12, 2  ;;  %v487_v22 = vsel %vm130_vm0, %v1179_v53, 0.0  ;;  %v495_v23 = vsel %vm130_vm0, %v1182_v54, 0.0  ;;  %v446_v24 = vrot.slane %v445_v16, 2 }
  0x57   :  { %v455_v25 = vrot.slane %v454_v17, 2  ;;  %v463_v26 = vadd.f32 %v462_v18, %v461_v10  ;;  %v472_v27 = vadd.f32 %v471_v19, %v470_v11  ;;  %v480_v29 = vrot.slane %v479_v21, 4  ;;  %v1273_v11 = vld [vmem:[#allocation9 + $0x98] sm:$0xff]  }
  0x58   :  { %v438_v28 = vadd.f32 %v437_v20, %v436_v12  ;;  %v488_v30 = vadd.f32 %v487_v22, %v486_v15  ;;  %v496_v31 = vsel %vm130_vm0, %v1183_v55, 0.0  ;;  %v447_v32 = vadd.f32 %v446_v24, %v445_v16  ;;  %v1274_v12 = vld [vmem:[#allocation9 + $0xa0] sm:$0xff]   ;;  %v1276_v22 = vld [vmem:[#allocation9 + $0xb0] sm:$0xff]  }
  0x59   :  { %v456_v33 = vadd.f32 %v455_v25, %v454_v17  ;;  %v464_v34 = vrot.slane %v463_v26, 2  ;;  %v473_v35 = vrot.slane %v472_v27, 2  ;;  %v481_v37 = vadd.f32 %v480_v29, %v479_v21  ;;  %v1275_v17 = vld [vmem:[#allocation9 + $0xa8] sm:$0xff]   ;;  %v261_v24 = vld [vmem:[#allocation12 + $0x10] sm:$0xff]  ;;  %v1277_v29 = vld [vmem:[#allocation9 + $0xb8] sm:$0xff]  }
  0x5a   :  { %v439_v36 = vrot.slane %v438_v28, 1  ;;  %v489_v38 = vrot.slane %v488_v30, 4  ;;  %v497_v39 = vadd.f32 %v496_v31, %v495_v23  ;;  %v448_v40 = vrot.slane %v447_v32, 1  ;;  %v262_v23 = vld [vmem:[#allocation12 + $0x18] sm:$0xff] }
  0x5b   :  { %v457_v41 = vrot.slane %v456_v33, 1  ;;  %v465_v42 = vadd.f32 %v464_v34, %v463_v26  ;;  %v474_v43 = vadd.f32 %v473_v35, %v472_v27  ;;  %v482_v45 = vrot.slane %v481_v37, 2  ;;  %278 = vmatpush.msra.mxu1 %v262_v23 }
  0x5c   :  { %v440_v44 = vadd.f32 %v439_v36, %v438_v28  ;;  %v490_v46 = vadd.f32 %v489_v38, %v488_v30  ;;  %v498_v47 = vrot.slane %v497_v39, 4  ;;  %v449_v48 = vadd.f32 %v448_v40, %v447_v32 }
  0x5d   :  { %v458_v49 = vadd.f32 %v457_v41, %v456_v33  ;;  %v466_v50 = vrot.slane %v465_v42, 1  ;;  %v475_v51 = vrot.slane %v474_v43, 1  ;;  %v483_v53 = vadd.f32 %v482_v45, %v481_v37  ;;  %279 = vmatpush.msra.mxu1 %v261_v24 }
  0x5e   :  { %v491_v54 = vrot.slane %v490_v46, 2  ;;  %v499_v55 = vadd.f32 %v498_v47, %v497_v39  ;;  %v648_v56 = vmul.f32 0.0625, %v440_v44  ;;  %v649_v59 = vmul.f32 0.0625, %v449_v48 }
  0x5f   :  { %v467_v57 = vadd.f32 %v466_v50, %v465_v42  ;;  %v476_v58 = vadd.f32 %v475_v51, %v474_v43  ;;  %v650_v60 = vmul.f32 0.0625, %v458_v49  ;;  %v484_v61 = vrot.slane %v483_v53, 1 }
  0x60   :  { %v492_v62 = vadd.f32 %v491_v54, %v490_v46  ;;  %v500_v63 = vrot.slane %v499_v55, 2  ;;  %v1218_v0 = vunpack.c.l.bf16 %v1270_v52  ;;  %v701_v5 = vsel %vm223_vm1, %v649_v59, %v648_v56 }
  0x61   :  { %v651_v3 = vmul.f32 0.0625, %v467_v57  ;;  %v652_v4 = vmul.f32 0.0625, %v476_v58  ;;  %v1219_v6 = vunpack.c.h.bf16 %v1270_v52  ;;  %v485_v7 = vadd.f32 %v484_v61, %v483_v53 }
  0x62   :  { %v493_v8 = vrot.slane %v492_v62, 1  ;;  %v501_v9 = vadd.f32 %v500_v63, %v499_v55  ;;  %v703_v10 = vsel %vm225_vm2, %v650_v60, %v701_v5  ;;  %v1222_v14 = vunpack.c.l.bf16 %v1271_v1 }
  0x63   :  { %v705_v13 = vsel %vm227_vm3, %v651_v3, %v703_v10  ;;  %v1223_v15 = vunpack.c.h.bf16 %v1271_v1  ;;  %v1226_v16 = vunpack.c.l.bf16 %v1272_v2  ;;  %v653_v20 = vmul.f32 0.0625, %v485_v7 }
  0x64   :  { %v494_v18 = vadd.f32 %v493_v8, %v492_v62  ;;  %v502_v19 = vrot.slane %v501_v9, 1  ;;  %v707_v21 = vsel %vm229_vm4, %v652_v4, %v705_v13  ;;  %v1227_v25 = vunpack.c.h.bf16 %v1272_v2 }
  0x65   :  { %v1230_v26 = vunpack.c.l.bf16 %v1273_v11  ;;  %v1231_v27 = vunpack.c.h.bf16 %v1273_v11  ;;  %v1234_v28 = vunpack.c.l.bf16 %v1274_v12  ;;  %v709_v32 = vsel %vm231_vm5, %v653_v20, %v707_v21 }
  0x66   :  { %v503_v30 = vadd.f32 %v502_v19, %v501_v9  ;;  %v654_v31 = vmul.f32 0.0625, %v494_v18  ;;  %v1235_v33 = vunpack.c.h.bf16 %v1274_v12  ;;  %v1238_v34 = vunpack.c.l.bf16 %v1275_v17 }
  0x67   :  { %v1239_v35 = vunpack.c.h.bf16 %v1275_v17  ;;  %v1242_v36 = vunpack.c.l.bf16 %v1276_v22  ;;  %v1243_v37 = vunpack.c.h.bf16 %v1276_v22  ;;  %v1246_v40 = vunpack.c.l.bf16 %v1277_v29 }
  0x68   :  { %v655_v38 = vmul.f32 0.0625, %v503_v30  ;;  %v711_v39 = vsel %vm233_vm6, %v654_v31, %v709_v32  ;;  %v1247_v41 = vunpack.c.h.bf16 %v1277_v29  ;;  %v576_v42 = vsel %vm130_vm0, %v1218_v0, 0.0 }
  0x69   :  { %v577_v43 = vsel %vm130_vm0, %v1219_v6, 0.0  ;;  %v585_v44 = vsel %vm130_vm0, %v1222_v14, 0.0  ;;  %v586_v45 = vsel %vm130_vm0, %v1223_v15, 0.0  ;;  %v594_v49 = vsel %vm130_vm0, %v1226_v16, 0.0 }
  0x6a   :  { %v713_v46 = vsel %vm235_vm7, %v655_v38, %v711_v39  ;;  %v578_v47 = vadd.f32 %v577_v43, %v576_v42  ;;  %v587_v48 = vadd.f32 %v586_v45, %v585_v44  ;;  %v595_v50 = vsel %vm130_vm0, %v1227_v25, 0.0 }
  0x6b   :  { %1109 = vmatmul.msk.f32.vlgmr.msra.gmra.mxu2 %vm130_vm0, %v713_v46  ;;  %v603_v51 = vsel %vm130_vm0, %v1230_v26, 0.0  ;;  %v604_v52 = vsel %vm130_vm0, %v1231_v27, 0.0  ;;  %v612_v53 = vsel %vm130_vm0, %v1234_v28, 0.0  ;;  %v596_v56 = vadd.f32 %v595_v50, %v594_v49 }
  0x6c   :  { %v579_v54 = vrot.slane %v578_v47, 4  ;;  %v588_v55 = vrot.slane %v587_v48, 4  ;;  %v605_v57 = vadd.f32 %v604_v52, %v603_v51  ;;  %v613_v58 = vsel %vm130_vm0, %v1235_v33, 0.0 }
  0x6d   :  { %v621_v59 = vsel %vm130_vm0, %v1238_v34, 0.0  ;;  %v622_v60 = vsel %vm130_vm0, %v1239_v35, 0.0  ;;  %v630_v61 = vsel %vm130_vm0, %v1242_v36, 0.0  ;;  %v597_v0 = vrot.slane %v596_v56, 4 }
  0x6e   :  { %v580_v62 = vadd.f32 %v579_v54, %v578_v47  ;;  %v589_v63 = vadd.f32 %v588_v55, %v587_v48  ;;  %v606_v1 = vrot.slane %v605_v57, 4  ;;  %v614_v2 = vadd.f32 %v613_v58, %v612_v53 }
  0x6f   :  { %v623_v3 = vadd.f32 %v622_v60, %v621_v59  ;;  %v631_v4 = vsel %vm130_vm0, %v1243_v37, 0.0  ;;  %v639_v5 = vsel %vm130_vm0, %v1246_v40, 0.0  ;;  %v598_v8 = vadd.f32 %v597_v0, %v596_v56 }
  0x70   :  { %v581_v6 = vrot.slane %v580_v62, 2  ;;  %v590_v7 = vrot.slane %v589_v63, 2  ;;  %v607_v9 = vadd.f32 %v606_v1, %v605_v57  ;;  %v615_v10 = vrot.slane %v614_v2, 4 }
  0x71   :  { %v624_v11 = vrot.slane %v623_v3, 4  ;;  %v632_v12 = vadd.f32 %v631_v4, %v630_v61  ;;  %v640_v13 = vsel %vm130_vm0, %v1247_v41, 0.0  ;;  %v599_v16 = vrot.slane %v598_v8, 2  ;;  %v1301_v4 = vld [vmem:[%s1691_s4] ss:$0 sm:$0xff] }
  0x72   :  { %v582_v14 = vadd.f32 %v581_v6, %v580_v62  ;;  %v591_v15 = vadd.f32 %v590_v7, %v589_v63  ;;  %v608_v17 = vrot.slane %v607_v9, 2  ;;  %v616_v18 = vadd.f32 %v615_v10, %v614_v2  ;;  %v260_v2 = vld [vmem:[#allocation12 + $0x8] sm:$0xff]  ;;  %v1302_v7 = vld [vmem:[%s1691_s4] ss:$0 sm:$0xff] }
  0x73   :  { %v625_v19 = vadd.f32 %v624_v11, %v623_v3  ;;  %v633_v20 = vrot.slane %v632_v12, 4  ;;  %v641_v21 = vadd.f32 %v640_v13, %v639_v5  ;;  %v600_v24 = vadd.f32 %v599_v16, %v598_v8  ;;  %280 = vmatpush.msra.mxu1 %v260_v2  ;;  %v259_v3 = vld [vmem:[#allocation12] sm:$0xff] }
  0x74   :  { %v583_v22 = vrot.slane %v582_v14, 1  ;;  %v592_v23 = vrot.slane %v591_v15, 1  ;;  %v609_v25 = vadd.f32 %v608_v17, %v607_v9  ;;  %v617_v26 = vrot.slane %v616_v18, 2 }
  0x75   :  { %v626_v27 = vrot.slane %v625_v19, 2  ;;  %v634_v28 = vadd.f32 %v633_v20, %v632_v12  ;;  %v642_v29 = vrot.slane %v641_v21, 4  ;;  %v601_v32 = vrot.slane %v600_v24, 1  ;;  %281 = vmatpush.msra.mxu1 %v259_v3 }
  0x76   :  { %v584_v30 = vadd.f32 %v583_v22, %v582_v14  ;;  %v593_v31 = vadd.f32 %v592_v23, %v591_v15  ;;  %v610_v33 = vrot.slane %v609_v25, 1  ;;  %v618_v34 = vadd.f32 %v617_v26, %v616_v18 }
  0x77   :  { %v627_v35 = vadd.f32 %v626_v27, %v625_v19  ;;  %v635_v36 = vrot.slane %v634_v28, 2  ;;  %v643_v37 = vadd.f32 %v642_v29, %v641_v21  ;;  %v602_v38 = vadd.f32 %v601_v32, %v600_v24 }
  0x78   :  { %v611_v39 = vadd.f32 %v610_v33, %v609_v25  ;;  %v664_v40 = vmul.f32 0.0625, %v584_v30  ;;  %v665_v41 = vmul.f32 0.0625, %v593_v31  ;;  %v619_v42 = vrot.slane %v618_v34, 1  ;;  %v1303_v25 = vld [vmem:[%s1693_s6] ss:$0 sm:$0xff]  ;;  %s1449_s6 = smov 96  }
  0x79   :  { %v628_v43 = vrot.slane %v627_v35, 1  ;;  %v636_v44 = vadd.f32 %v635_v36, %v634_v28  ;;  %v644_v45 = vrot.slane %v643_v37, 2  ;;  %v666_v46 = vmul.f32 0.0625, %v602_v38 }
  0x7a   :  { %v667_v47 = vmul.f32 0.0625, %v611_v39  ;;  %v721_v48 = vsel %vm223_vm1, %v665_v41, %v664_v40  ;;  %v620_v49 = vadd.f32 %v619_v42, %v618_v34  ;;  %v789_v27 = vlaneseq }
  0x7b   :  { %v629_v50 = vadd.f32 %v628_v43, %v627_v35  ;;  %v637_v51 = vrot.slane %v636_v44, 1  ;;  %v645_v52 = vadd.f32 %v644_v45, %v643_v37  ;;  %v722_v53 = vsel %vm225_vm2, %v666_v46, %v721_v48 }
  0x7c   :  { %v668_v56 = vmul.f32 0.0625, %v620_v49  ;;  %v723_v58 = vsel %vm227_vm3, %v667_v47, %v722_v53  ;;  %v1623_v28 = vand.u32 127, %v789_v27  ;;  %vm293_vm8 = vcmask 326912  }
  0x7d   :  { %v638_v54 = vadd.f32 %v637_v51, %v636_v44  ;;  %v646_v55 = vrot.slane %v645_v52, 1  ;;  %v669_v57 = vmul.f32 0.0625, %v629_v50  ;;  %vm333_vm9 = vcmask 7168  }
  0x7e   :  { %v724_v61 = vsel %vm229_vm4, %v668_v56, %v723_v58  ;;  %vm304_vm10 = vcmask 64512   ;;  %vm835_vm11 = vcmask 31744   ;;  %v1634_v53 = vshrl.u32 %v789_v27, 7 }
  0x7f   :  { %v647_v59 = vadd.f32 %v646_v55, %v645_v52  ;;  %v670_v60 = vmul.f32 0.0625, %v638_v54  ;;  %v725_v62 = vsel %vm231_vm5, %v669_v57, %v724_v61 }
  0x80   :  { %1297 = vset.pattern.permute.xlu0 %v1634_v53  ;;  %1298 = vset.pattern.permute.xlu1 %v1634_v53 }
  0x81   :  { %v671_v63 = vmul.f32 0.0625, %v647_v59  ;;  %v726_v0 = vsel %vm233_vm6, %v670_v60, %v725_v62 }
  0x83   :  { %v727_v1 = vsel %vm235_vm7, %v671_v63, %v726_v0 }
  0x84   :  { %1111 = vmatmul.msk.f32.gmra.mxu3 %vm130_vm0, %v727_v1 }
  0xb6   :  { %v256_v5 = vpop.f32.mrf.mxu0 }
  0xb7   :  { %v257_v6 = vadd.f32 %v1301_v4, %v256_v5  ;;  %v867_v5 = vld [vmem:[%s1689_s2] sm:$0xff]  ;;  %s1453_s2 = smov [#allocation14]  }
  0xb8   :  { %s1093_s30 = sshll.u32 %s1453_s2, 4  ;;  %s1094_s30 = int_to_ptr.vmem [resolvable:$true] %s1093_s30 }
  0xb9   :  { %1108 = vmatmul.msk.f32.vlgmr.msra.gmra.mxu1 %vm130_vm0, %v257_v6 }
  0xd5   :  { %v754_v8 = vpop.f32.mrf.mxu3 }
  0xd6   :  { %v755_v9 = vadd.f32 %v1302_v7, %v754_v8 }
  0xd8   :  { %764 = vst.msk [vmem:[#allocation5 + $0x8] sm:$0xff] %vm130_vm0, %v755_v9  ;;  %v882_v9 = vperm.slane %v867_v5, 2 }
  0xdf   :  { %v771_v22 = vld [vmem:[#allocation5 + $0x8] sm:$0xff] }
  0xee   :  { %v751_v10 = vpop.f32.mrf.mxu2 }
  0xef   :  { %v752_v11 = vadd.f32 %v1302_v7, %v751_v10  ;;  %v903_v10 = vperm.slane %v867_v5, 5 }
  0xf1   :  { %763 = vst.msk [vmem:[#allocation5] sm:$0xff] %vm130_vm0, %v752_v11  ;;  %v917_v11 = vperm.slane %v867_v5, 7 }
  0xf8   :  { %v770_v16 = vld [vmem:[#allocation5] sm:$0xff] }
 0x107   :  { %v757_v12 = vpop.f32.mrf.mxu3 }
 0x108   :  { %v758_v13 = vadd.f32 %v1302_v7, %v757_v12  ;;  %v875_v7 = vperm.slane %v867_v5, 1  ;;  %v868_v12 = vperm.slane %v867_v5, 0 }
 0x10a   :  { %765 = vst.msk [vmem:[#allocation5 + $0x10] sm:$0xff] %vm130_vm0, %v758_v13  ;;  %v889_v13 = vperm.slane %v867_v5, 3 }
 0x111   :  { %v772_v15 = vld [vmem:[#allocation5 + $0x10] sm:$0xff] }
 0x136   :  { %v283_v14 = vpop.f32.mrf.mxu1 }
 0x137   :  { %328 = vst.msk [vmem:[#allocation2] sm:$0xff] %vm130_vm0, %v283_v14  ;;  %v329_v39 = vmul.f32 %v283_v14, %v257_v6 }
 0x139   :  { %v330_v40 = vsel %vm130_vm0, %v329_v39, 0.0 }
 0x13e   :  { %v769_v17 = vld [vmem:[#allocation2] sm:$0xff] }
 0x13f   :  { %v775_v18 = vmul.f32 %v772_v15, %v769_v17  ;;  %v773_v19 = vmul.f32 %v770_v16, %v769_v17  ;;  %v774_v23 = vmul.f32 %v771_v22, %v769_v17  ;;  %v910_v15 = vperm.slane %v867_v5, 6 }
 0x140   :  { %v1451_v16 = vmov 0  }
 0x141   :  { %v782_v20 = vsel %vm130_vm0, %v775_v18, 0.0  ;;  %v776_v21 = vsel %vm130_vm0, %v773_v19, 0.0  ;;  %v779_v24 = vsel %vm130_vm0, %v774_v23, 0.0 }
 0x142   :  { %783 = vadd.xlane.f32.xlu1 %v782_v20  ;;  %777 = vadd.xlane.f32.xlu0 %v776_v21 }
 0x14a   :  { %780 = vadd.xlane.f32.xlu0 %v779_v24 }
 0x15b   :  { %289 = vrot.lane.b32.xlu1 %v1303_v25, %s1448_s26 }
 0x1b5   :  { %v778_v26 = vpop.xlane.xlu0 %777  ;;  %v784_v29 = vpop.xlane.xlu1 %783 }
 0x1b6   :  { %v791_v31 = vperm.slane %v778_v26, %v1623_v28  ;;  %v793_v33 = vperm.slane %v784_v29, %v1623_v28 }
 0x1bd   :  { %v781_v30 = vpop.xlane.xlu0 %780 }
 0x1be   :  { %v792_v32 = vperm.slane %v781_v30, %v1623_v28 }
 0x1c0   :  { %v794_v34 = vsel %vm223_vm1, %v792_v32, %v791_v31 }
 0x1c1   :  { %v795_v35 = vsel %vm225_vm2, %v793_v33, %v794_v34 }
 0x1c2   :  { %797 = vxpose.xlu2.b32.start.end [1/1] (short) (narrow) %v795_v35, 8 }
 0x1cd   :  { %v290_v36 = vpop.permute.xlu1 %289 }
 0x1ce   :  { %v292_v37 = vadd.f32 %v290_v36, %v283_v14  ;;  %v896_v14 = vperm.slane %v867_v5, 4 }
 0x1d0   :  { %v294_v38 = vsel %vm293_vm8, %v292_v37, -inf }
 0x1d1   :  { %295 = vmax.xlane.f32.xlu1 %v294_v38 }
 0x224   :  { %1296 = vset.pattern.permute.xlu2 %v1634_v53 }
 0x233   :  { %331 = vadd.xlane.f32.xlu2 %v330_v40 }
 0x244   :  { %v296_v41 = vpop.xlane.xlu1 %295 }
 0x245   :  { %v297_v42 = vsub.f32 %v292_v37, %v296_v41 }
 0x247   :  { %v298_v43 = vmul.f32 1.442695, %v297_v42 }
 0x249   :  { %1304 = vpow2.f32 %v298_v43 }
 0x24b   :  { %873 = vperm.xlu2 %1296, %v868_v12  }
 0x24f   :  { %v1305_v44 = vpop.eup %1304 }
 0x250   :  { %301 = vrot.lane.b32.xlu1 %v1305_v44, %s1449_s6 }
 0x253   :  { %901 = vperm.xlu2 %1296, %v896_v14  }
 0x25b   :  { %v813_v45 = vpop.trf.xlu2 }
 0x25c   :  { %830 = vrot.lane.b32.xlu0 %v813_v45, %s1450_s27 }
 0x2a6   :  { %v332_v46 = vpop.xlane.xlu2 %331 }
 0x2a7   :  { %334 = vst.msk [vmem:[#allocation4] sm:$0xff] %vm333_vm9, %v332_v46 }
 0x2ae   :  { %v785_v50 = vld [vmem:[#allocation4] sm:$0xff]  ;;  %v874_v39 = vpop.permute.xlu2 %873 }
 0x2b6   :  { %v902_v41 = vpop.permute.xlu2 %901 }
 0x2c2   :  { %v302_v47 = vpop.permute.xlu1 %301 }
 0x2c3   :  { %v305_v48 = vsel %vm304_vm10, %v302_v47, 0.0 }
 0x2c4   :  { %306 = vadd.xlane.f32.xlu0 %v305_v48 }
 0x2ce   :  { %v831_v49 = vpop.permute.xlu0 %830 }
 0x2cf   :  { %v834_v51 = vsel %vm333_vm9, %v785_v50, %v831_v49  ;;  %v1452_v49 = vmov 0.0  }
 0x2d0   :  { %v836_v52 = vsel %vm835_vm11, %v834_v51, -inf }
 0x2d1   :  { %837 = vmax.xlane.f32.xlu0 %v836_v52 }
 0x337   :  { %v307_v54 = vpop.xlane.xlu0 %306 }
 0x338   :  { %1306 = vrcp.f32 %v307_v54  ;;  %v319_v58 = vand.u32 2147483648, %v307_v54  ;;  %v317_v60 = vand.u32 2147483647, %v307_v54  ;;  %vm313_vm13 = vweird.f32 %v307_v54 }
 0x33a   :  { %v320_v0 = vor.u32 1.1754944e-38, %v319_v58  ;;  %vm318_vm15 = vcmp.eq.f32.partialorder %v317_v60, 8.507059e+37 }
 0x33e   :  { %v1307_v55 = vpop.eup %1306 }
 0x33f   :  { %v309_v56 = vmul.f32 %v1307_v55, %v307_v54  ;;  %vm314_vm12 = vweird.f32 %v1307_v55 }
 0x340   :  { %vm315_vm14 = vmor %vm313_vm13, %vm314_vm12  ;;  %vm924_vm12 = vcmp.eq.s32.totalorder %v874_v39, %v1623_v28 }
 0x341   :  { %v310_v57 = vsub.f32 1.0, %v309_v56  ;;  %v1112_v50 = vsel %vm924_vm12, 1.0, %v1452_v49 }
 0x343   :  { %v311_v59 = vmul.f32 %v1307_v55, %v310_v57 }
 0x344   :  { %v838_v61 = vpop.xlane.xlu0 %837 }
 0x345   :  { %v839_v62 = vsub.f32 %v834_v51, %v838_v61  ;;  %v312_v63 = vadd.f32 %v1307_v55, %v311_v59 }
 0x347   :  { %v840_v1 = vmul.f32 1.442695, %v839_v62  ;;  %v316_v2 = vsel %vm315_vm14, %v1307_v55, %v312_v63  ;;  %vm928_vm14 = vcmp.eq.s32.totalorder %v902_v41, %v1623_v28 }
 0x348   :  { %v321_v3 = vsel %vm318_vm15, %v320_v0, %v316_v2  ;;  %vm1012_vm15 = vcmask 59392   ;;  %v1116_v55 = vsel %vm928_vm14, 1.0, %v1452_v49 }
 0x349   :  { %1308 = vpow2.f32 %v840_v1  ;;  %v322_v4 = vmul.f32 %v1305_v44, %v321_v3 }
 0x34b   :  { %324 = vrot.lane.b32.xlu0 %v322_v4, %s1449_s6 }
 0x34f   :  { %v1309_v6 = vpop.eup %1308 }
 0x350   :  { %v842_v8 = vsel %vm835_vm11, %v1309_v6, 0.0 }
 0x351   :  { %843 = vadd.xlane.f32.xlu1 %v842_v8 }
 0x353   :  { %880 = vperm.xlu0 %1297, %v875_v7  }
 0x35b   :  { %887 = vperm.xlu0 %1297, %v882_v9  }
 0x363   :  { %908 = vperm.xlu0 %1297, %v903_v10  }
 0x36a   :  { %894 = vperm.xlu1 %1298, %v889_v13  }
 0x36b   :  { %922 = vperm.xlu0 %1297, %v917_v11  }
 0x372   :  { %915 = vperm.xlu1 %1298, %v910_v15  }
 0x373   :  { %1299 = vset.pattern.permute.xlu0 %v1451_v16 }
 0x3bd   :  { %v325_v17 = vpop.permute.xlu0 %324 }
 0x3be   :  { %327 = vst.msk [vmem:[#allocation3] sm:$0xff] %vm304_vm10, %v325_v17 }
 0x3c4   :  { %v844_v18 = vpop.xlane.xlu1 %843 }
 0x3c5   :  { %1310 = vrcp.f32 %v844_v18  ;;  %v856_v22 = vand.u32 2147483648, %v844_v18  ;;  %v854_v24 = vand.u32 2147483647, %v844_v18  ;;  %vm850_vm8 = vweird.f32 %v844_v18  ;;  %v881_v40 = vpop.permute.xlu0 %880 }
 0x3c7   :  { %v857_v26 = vor.u32 1.1754944e-38, %v856_v22  ;;  %vm855_vm11 = vcmp.eq.f32.partialorder %v854_v24, 8.507059e+37 }
 0x3cb   :  { %v1311_v19 = vpop.eup %1310 }
 0x3cc   :  { %v846_v20 = vmul.f32 %v1311_v19, %v844_v18  ;;  %vm851_vm0 = vweird.f32 %v1311_v19 }
 0x3cd   :  { %vm852_vm9 = vmor %vm850_vm8, %vm851_vm0  ;;  %v888_v42 = vpop.permute.xlu0 %887 }
 0x3ce   :  { %v847_v21 = vsub.f32 1.0, %v846_v20  ;;  %vm926_vm13 = vcmp.eq.s32.totalorder %v888_v42, %v1623_v28 }
 0x3cf   :  { %v1114_v54 = vsel %vm926_vm13, 1.0, %v1452_v49 }
 0x3d0   :  { %v848_v23 = vmul.f32 %v1311_v19, %v847_v21 }
 0x3d2   :  { %v849_v25 = vadd.f32 %v1311_v19, %v848_v23 }
 0x3d4   :  { %v853_v27 = vsel %vm852_vm9, %v1311_v19, %v849_v25  ;;  %vm925_vm9 = vcmp.eq.s32.totalorder %v881_v40, %v1623_v28 }
 0x3d5   :  { %v858_v29 = vsel %vm855_vm11, %v857_v26, %v853_v27  ;;  %v909_v44 = vpop.permute.xlu0 %908  ;;  %v1113_v3 = vsel %vm925_vm9, 1.0, %v1452_v49 }
 0x3d6   :  { %v859_v30 = vmul.f32 %v1309_v6, %v858_v29  ;;  %vm929_vm0 = vcmp.eq.s32.totalorder %v909_v44, %v1623_v28 }
 0x3d7   :  { %v1117_v62 = vsel %vm929_vm0, 1.0, %v1452_v49 }
 0x3d8   :  { %863 = vperm.xlu0 %1299, %v859_v30   ;;  %v983_v31 = vperm.slane %v859_v30, 5  ;;  %v948_v32 = vperm.slane %v859_v30, 0  ;;  %v962_v33 = vperm.slane %v859_v30, 2  ;;  %v955_v34 = vperm.slane %v859_v30, 1 }
 0x3d9   :  { %v976_v35 = vperm.slane %v859_v30, 4  ;;  %v969_v36 = vperm.slane %v859_v30, 3  ;;  %v990_v37 = vperm.slane %v859_v30, 6  ;;  %v997_v38 = vperm.slane %v859_v30, 7 }
 0x3da   :  { %988 = vperm.xlu1 %1298, %v983_v31   ;;  %953 = vperm.xlu2 %1296, %v948_v32  }
 0x3dc   :  { %v895_v45 = vpop.permute.xlu1 %894 }
 0x3dd   :  { %v1646_v47 = vpop.permute.xlu0 %922  ;;  %vm927_vm11 = vcmp.eq.s32.totalorder %v895_v45, %v1623_v28 }
 0x3de   :  { %v1115_v20 = vsel %vm927_vm11, 1.0, %v1452_v49  ;;  %vm931_vm12 = vcmp.eq.s32.totalorder %v1646_v47, %v1623_v28 }
 0x3df   :  { %v1119_v41 = vsel %vm931_vm12, 1.0, %v1452_v49 }
 0x3e0   :  { %1300 = vset.pattern.permute.xlu0 %v1634_v53 }
 0x3e2   :  { %967 = vperm.xlu2 %1296, %v962_v33  }
 0x3e4   :  { %v916_v48 = vpop.permute.xlu1 %915 }
 0x3e5   :  { %vm930_vm8 = vcmp.eq.s32.totalorder %v916_v48, %v1623_v28 }
 0x3e6   :  { %v1118_v0 = vsel %vm930_vm8, 1.0, %v1452_v49 }
 0x3e8   :  { %960 = vperm.xlu0 %1300, %v955_v34  }
 0x3ea   :  { %981 = vperm.xlu2 %1296, %v976_v35  }
 0x3f0   :  { %974 = vperm.xlu0 %1300, %v969_v36  }
 0x3f2   :  { %995 = vperm.xlu2 %1296, %v990_v37  }
 0x3f8   :  { %1002 = vperm.xlu0 %1300, %v997_v38  }
 0x434   :  { %v954_v43 = vpop.permute.xlu2 %953 }
 0x435   :  { %v1004_v52 = vmul.f32 %v1112_v50, %v954_v43 }
 0x437   :  { %v1013_v57 = vsel %vm1012_vm15, %v1004_v52, 0.0 }
 0x438   :  { %v1014_v60 = vrot.slane %v1013_v57, 4 }
 0x43a   :  { %v1015_v7 = vadd.f32 %v1014_v60, %v1013_v57 }
 0x43c   :  { %v968_v46 = vpop.permute.xlu2 %967  ;;  %v1016_v14 = vrot.slane %v1015_v7, 2 }
 0x43d   :  { %v1006_v56 = vmul.f32 %v1114_v54, %v968_v46 }
 0x43e   :  { %v1017_v25 = vadd.f32 %v1016_v14, %v1015_v7 }
 0x43f   :  { %v1027_v61 = vsel %vm1012_vm15, %v1006_v56, 0.0 }
 0x440   :  { %v1028_v5 = vrot.slane %v1027_v61, 4  ;;  %v1018_v35 = vrot.slane %v1017_v25, 1 }
 0x442   :  { %v1029_v13 = vadd.f32 %v1028_v5, %v1027_v61  ;;  %v1019_v46 = vadd.f32 %v1018_v35, %v1017_v25 }
 0x444   :  { %v982_v51 = vpop.permute.xlu2 %981  ;;  %v1030_v22 = vrot.slane %v1029_v13, 2 }
 0x445   :  { %v1008_v58 = vmul.f32 %v1116_v55, %v982_v51 }
 0x446   :  { %v1031_v33 = vadd.f32 %v1030_v22, %v1029_v13 }
 0x447   :  { %v1041_v2 = vsel %vm1012_vm15, %v1008_v58, 0.0 }
 0x448   :  { %v1042_v9 = vrot.slane %v1041_v2, 4  ;;  %v1032_v43 = vrot.slane %v1031_v33, 1 }
 0x44a   :  { %v1652_v53 = vpop.permute.xlu0 %863  ;;  %v1043_v18 = vadd.f32 %v1042_v9, %v1041_v2  ;;  %v1033_v55 = vadd.f32 %v1032_v43, %v1031_v33 }
 0x44c   :  { %v989_v59 = vpop.permute.xlu1 %988  ;;  %v996_v1 = vpop.permute.xlu2 %995  ;;  %v1044_v29 = vrot.slane %v1043_v18, 2 }
 0x44d   :  { %v1009_v63 = vmul.f32 %v1117_v62, %v989_v59  ;;  %v1010_v8 = vmul.f32 %v1118_v0, %v996_v1 }
 0x44e   :  { %v1045_v38 = vadd.f32 %v1044_v29, %v1043_v18 }
 0x44f   :  { %v1048_v10 = vsel %vm1012_vm15, %v1009_v63, 0.0  ;;  %v1055_v16 = vsel %vm1012_vm15, %v1010_v8, 0.0 }
 0x450   :  { %v1049_v15 = vrot.slane %v1048_v10, 4  ;;  %v1056_v23 = vrot.slane %v1055_v16, 4  ;;  %v1046_v51 = vrot.slane %v1045_v38, 1 }
 0x452   :  { %v1050_v26 = vadd.f32 %v1049_v15, %v1048_v10  ;;  %v1057_v34 = vadd.f32 %v1056_v23, %v1055_v16  ;;  %v1047_v49 = vadd.f32 %v1046_v51, %v1045_v38 }
 0x454   :  { %v1051_v36 = vrot.slane %v1050_v26, 2  ;;  %v1058_v44 = vrot.slane %v1057_v34, 2 }
 0x456   :  { %v1052_v48 = vadd.f32 %v1051_v36, %v1050_v26  ;;  %v1059_v56 = vadd.f32 %v1058_v44, %v1057_v34 }
 0x458   :  { %v1053_v57 = vrot.slane %v1052_v48, 1  ;;  %v1060_v63 = vrot.slane %v1059_v56, 1 }
 0x45a   :  { %v961_v4 = vpop.permute.xlu0 %960  ;;  %v1054_v1 = vadd.f32 %v1053_v57, %v1052_v48  ;;  %v1061_v5 = vadd.f32 %v1060_v63, %v1059_v56 }
 0x45b   :  { %v1005_v6 = vmul.f32 %v1113_v3, %v961_v4 }
 0x45d   :  { %v1020_v11 = vsel %vm1012_vm15, %v1005_v6, 0.0  ;;  %v860_v6 = vld [vmem:[#allocation3] sm:$0xff] }
 0x45e   :  { %v1021_v12 = vrot.slane %v1020_v11, 4  ;;  %v866_v8 = vmul.f32 %v1652_v53, %v860_v6 }
 0x460   :  { %v1022_v17 = vadd.f32 %v1021_v12, %v1020_v11 }
 0x462   :  { %v1023_v19 = vrot.slane %v1022_v17, 2  ;;  %v975_v21 = vpop.permute.xlu0 %974 }
 0x463   :  { %v1007_v24 = vmul.f32 %v1115_v20, %v975_v21 }
 0x464   :  { %v1024_v27 = vadd.f32 %v1023_v19, %v1022_v17 }
 0x465   :  { %v1034_v30 = vsel %vm1012_vm15, %v1007_v24, 0.0 }
 0x466   :  { %v1025_v31 = vrot.slane %v1024_v27, 1  ;;  %v1035_v32 = vrot.slane %v1034_v30, 4 }
 0x468   :  { %v1036_v37 = vadd.f32 %v1035_v32, %v1034_v30  ;;  %v1026_v39 = vadd.f32 %v1025_v31, %v1024_v27 }
 0x46a   :  { %v1037_v40 = vrot.slane %v1036_v37, 2  ;;  %v1003_v42 = vpop.permute.xlu0 %1002  ;;  %v1077_v47 = vsel %vm223_vm1, %v1026_v39, %v1019_v46 }
 0x46b   :  { %v1011_v45 = vmul.f32 %v1119_v41, %v1003_v42  ;;  %v1078_v60 = vsel %vm225_vm2, %v1033_v55, %v1077_v47 }
 0x46c   :  { %v1038_v50 = vadd.f32 %v1037_v40, %v1036_v37 }
 0x46d   :  { %v1062_v28 = vsel %vm1012_vm15, %v1011_v45, 0.0 }
 0x46e   :  { %v1039_v52 = vrot.slane %v1038_v50, 1  ;;  %v1063_v54 = vrot.slane %v1062_v28, 4 }
 0x470   :  { %v1040_v58 = vadd.f32 %v1039_v52, %v1038_v50  ;;  %v1064_v59 = vadd.f32 %v1063_v54, %v1062_v28 }
 0x472   :  { %v1079_v61 = vsel %vm227_vm3, %v1040_v58, %v1078_v60  ;;  %v1065_v62 = vrot.slane %v1064_v59, 2 }
 0x473   :  { %v1080_v0 = vsel %vm229_vm4, %v1047_v49, %v1079_v61 }
 0x474   :  { %v1066_v2 = vadd.f32 %v1065_v62, %v1064_v59  ;;  %v1081_v4 = vsel %vm231_vm5, %v1054_v1, %v1080_v0 }
 0x475   :  { %v1082_v9 = vsel %vm233_vm6, %v1061_v5, %v1081_v4 }
 0x476   :  { %v1067_v3 = vrot.slane %v1066_v2, 1 }
 0x478   :  { %v1068_v7 = vadd.f32 %v1067_v3, %v1066_v2 }
 0x47a   :  { %v1083_v10 = vsel %vm235_vm7, %v1068_v7, %v1082_v9 }
 0x47b   :  { %v1085_v11 = vadd.f32 %v1083_v10, %v866_v8 }
 0x47d   :  { %1087 = vst.msk [vmem:[#allocation14] sm:$0xff] %vm304_vm10, %v1085_v11 }
 0x47e   :  { %1098 = dma.vmem_to_hbm [thread:$0]  %s1094_s30, 128, %s1096_s10, [#allocation8]  }
 0x47f   :  { %1438 = dma.done.wait [#allocation8], 128  }
 0x480   :  { %1439 = vsyncadd [#allocation8], 4294967168 }
 0x481   :  { %1103 = vsyncpa [#allocation7], 1 }
 0x482   :  { %1104 = vsyncpa [#allocation10], 1 }
 0x483   :  { %1105 = vsyncpa [#allocation13], 1 }
 0x484   :  { %1106 = vsyncpa [#allocation8], 1 }

</bundles_post_ra>
